<compile_context>
chip_gen: v5e
topology: v5e:2x2
jax: 0.10.0
libtpu: 0.0.40
codegen_flags: <defaults>
</compile_context>

<pallas_src>
import functools

import jax
import jax.numpy as jnp
from jax.experimental import pallas as pl
from jax.experimental.pallas import tpu as pltpu


def _round_up(x, m):
    return (x + m - 1) // m * m


# ---------------------------------------------------------------------------
# Path A: small vocab -- table resident in VMEM, one-hot MXU gather.
# ---------------------------------------------------------------------------
def _onehot_kernel(ids_ref, table_ref, pe_ref, out_ref):
    """ids_ref: (1, tile_s, 1) i32; table_ref: (V_pad, d_model);
    pe_ref: (tile_s, d_model) f32; out_ref: (1, tile_s, d_model)."""
    ids = ids_ref[0]                                            # (tile_s, 1), ids on sublanes
    tile_s = ids.shape[0]
    v_pad = table_ref.shape[0]
    vocab_iota = jax.lax.broadcasted_iota(jnp.int32, (tile_s, v_pad), 1)
    one_hot = (ids == vocab_iota).astype(table_ref.dtype)       # (tile_s, V_pad)
    emb = jnp.dot(one_hot, table_ref[...], preferred_element_type=jnp.float32)
    out_ref[0] = (emb + pe_ref[...]).astype(out_ref.dtype)      # PE folded into the store


# ---------------------------------------------------------------------------
# Path B: large vocab -- scalar-prefetched ids drive a manual DMA row gather.
# ---------------------------------------------------------------------------
def _gather_kernel(ids_ref, pe_ref, table_hbm, out_ref, stage, sems, *,
                   tile_s, s_pad, n_s):
    """ids_ref: SMEM (B*S_pad,) i32 (scalar prefetch); pe_ref: (tile_s, d_model) f32;
    table_hbm: HBM (V, d_model); out_ref: (1, tile_s, d_model);
    stage: VMEM (2, tile_s, d_model); sems: DMA sems (2, tile_s)."""
    b = pl.program_id(0)
    s = pl.program_id(1)
    slot = s % 2

    def issue(blk, sl):
        base = b * s_pad + blk * tile_s

        @pl.loop(0, tile_s)
        def _(r):
            tok = ids_ref[base + r]
            pltpu.make_async_copy(table_hbm.at[tok], stage.at[sl, r],
                                  sems.at[sl, r]).start()

    @pl.when(s == 0)                       # prime the pipeline for this batch row
    def _():
        issue(0, slot)

    if n_s > 1:                            # prefetch next seq tile into the other slot
        @pl.when(s + 1 < n_s)
        def _():
            issue(s + 1, 1 - slot)

    @pl.loop(0, tile_s)                    # wait for this tile's gathered rows
    def _(r):
        pltpu.make_async_copy(table_hbm.at[0], stage.at[slot, r],
                              sems.at[slot, r]).wait()

    rows = stage[slot]                                           # (tile_s, d_model)
    out_ref[0] = (rows.astype(jnp.float32) + pe_ref[...]).astype(out_ref.dtype)


# ---------------------------------------------------------------------------
# PE table (matches the PyTorch PositionalEncoding construction).
# ---------------------------------------------------------------------------
def make_positional_encoding(d_model, max_len):
    pos = jnp.arange(max_len, dtype=jnp.float32)[:, None]           # (max_len, 1)
    _2i = jnp.arange(0, d_model, 2, dtype=jnp.float32)              # (d_model/2,)
    angle = pos / jnp.power(10000.0, _2i / float(d_model))          # (max_len, d_model/2)
    pe = jnp.zeros((max_len, d_model), dtype=jnp.float32)
    pe = pe.at[:, 0::2].set(jnp.sin(angle))
    pe = pe.at[:, 1::2].set(jnp.cos(angle))
    return pe


def embedding_layer_forward(x_ids, word_emb_table, pe_table, *,
                            tile_s_max=256,
                            small_vocab_bytes=8 * 1024 * 1024,
                            force_gather=False):
    """x_ids: (B, S) int -> (B, S, d_model) in the table's dtype (eval-mode dropout)."""
    B, S = x_ids.shape
    vocab_len, d_model = word_emb_table.shape
    out_dtype = word_emb_table.dtype
    itemsize = jnp.dtype(out_dtype).itemsize

    v_pad = _round_up(vocab_len, 128)                # 128-aligned MXU contraction dim
    use_gather = force_gather or (v_pad * d_model * itemsize > small_vocab_bytes)

    # --- seq tiling: pad S up to a multiple of tile_s (never shrink tile_s) ---
    tile_s_cap = min(tile_s_max, 128) if use_gather else tile_s_max
    tile_s = min(_round_up(S, 8), _round_up(tile_s_cap, 8))
    s_pad = _round_up(S, tile_s)
    n_s = s_pad // tile_s

    # torch.nn.Embedding raises on out-of-range ids; we clamp (keeps DMAs in bounds).
    ids = jnp.clip(x_ids.astype(jnp.int32), 0, vocab_len - 1)
    if s_pad != S:
        ids = jnp.pad(ids, ((0, 0), (0, s_pad - S)))

    pe = pe_table[:S, :].astype(jnp.float32)
    if s_pad != S:
        pe = jnp.pad(pe, ((0, s_pad - S), (0, 0)))

    blk_bytes = tile_s * d_model

    if not use_gather:
        # ---- Path A: resident table + one-hot MXU gather ----------------------
        table = word_emb_table
        if v_pad != vocab_len:
            table = jnp.pad(table, ((0, v_pad - vocab_len), (0, 0)))   # zero rows: inert

        need = (v_pad * d_model * itemsize               # resident table
                + tile_s * v_pad * itemsize              # one-hot temporary
                + 2 * blk_bytes * 4                      # pe blocks (f32, double-buffered)
                + 2 * blk_bytes * itemsize               # out blocks (double-buffered)
                + (1 << 20))
        vmem_limit = int(min(64 << 20, max(32 << 20, int(need * 1.5))))

        grid_spec = pltpu.PrefetchScalarGridSpec(
            num_scalar_prefetch=0,
            grid=(B, n_s),
            in_specs=[
                pl.BlockSpec((1, tile_s, 1), lambda b, s: (b, s, 0)),
                pl.BlockSpec((v_pad, d_model), lambda b, s: (0, 0)),   # constant -> resident
                pl.BlockSpec((tile_s, d_model), lambda b, s: (s, 0)),
            ],
            out_specs=pl.BlockSpec((1, tile_s, d_model), lambda b, s: (b, s, 0)),
        )
        out = pl.pallas_call(
            _onehot_kernel,
            out_shape=jax.ShapeDtypeStruct((B, s_pad, d_model), out_dtype),
            grid_spec=grid_spec,
            compiler_params=pltpu.CompilerParams(
                dimension_semantics=("parallel", "parallel"),
                vmem_limit_bytes=vmem_limit),
        )(ids.reshape(B, s_pad, 1), table, pe)
    else:
        # ---- Path B: scalar-prefetch ids + manual DMA row gather --------------
        need = (2 * blk_bytes * itemsize                 # staging (double-buffered)
                + 2 * blk_bytes * 4                      # pe blocks
                + 2 * blk_bytes * itemsize               # out blocks
                + (1 << 20))
        vmem_limit = int(min(64 << 20, max(32 << 20, int(need * 1.5))))

        kernel = functools.partial(_gather_kernel, tile_s=tile_s, s_pad=s_pad, n_s=n_s)
        grid_spec = pltpu.PrefetchScalarGridSpec(
            num_scalar_prefetch=1,
            grid=(B, n_s),
            in_specs=[
                pl.BlockSpec((tile_s, d_model), lambda b, s, ids_smem: (s, 0)),  # pe
                pl.BlockSpec(memory_space=pl.ANY),                               # table in HBM
            ],
            out_specs=pl.BlockSpec((1, tile_s, d_model),
                                   lambda b, s, ids_smem: (b, s, 0)),
            scratch_shapes=[
                pltpu.VMEM((2, tile_s, d_model), word_emb_table.dtype),
                pltpu.SemaphoreType.DMA((2, tile_s)),
            ],
        )
        out = pl.pallas_call(
            kernel,
            out_shape=jax.ShapeDtypeStruct((B, s_pad, d_model), out_dtype),
            grid_spec=grid_spec,
            compiler_params=pltpu.CompilerParams(
                dimension_semantics=("parallel", "arbitrary"),
                vmem_limit_bytes=vmem_limit),
        )(ids.reshape(-1), pe, word_emb_table)

    if s_pad != S:
        out = out[:, :S, :]
    return out


if __name__ == "__main__":
    # Small, deterministic config (matches EmbeddingLayer(d_model, vocab_len, max_len, prob)).
    d_model = 128
    vocab_len = 40        # not a multiple of 128 -> exercises vocab padding
    max_len = 64
    batch = 2
    seq_len = 12          # not a multiple of 8 -> exercises seq padding / slicing

    key = jax.random.PRNGKey(0)
    k_emb, k_ids = jax.random.split(key)

    # nn.Embedding(vocab_len, d_model, padding_idx=0): N(0,1) init, row 0 zeroed.
    word_emb_table = jax.random.normal(k_emb, (vocab_len, d_model), dtype=jnp.float32)
    word_emb_table = word_emb_table.at[0, :].set(0.0)

    pe_table = make_positional_encoding(d_model, max_len)

    x_ids = jax.random.randint(k_ids, (batch, seq_len), 0, vocab_len, dtype=jnp.int32)

    # Pure-JAX reference (eval-mode dropout == identity).
    ref = word_emb_table[x_ids] + pe_table[:seq_len, :][None, :, :]

    # Path A: small-vocab fast path (table resident in VMEM, one-hot MXU gather).
    out_a = embedding_layer_forward(x_ids, word_emb_table, pe_table)
    out_a = jax.block_until_ready(out_a)
    assert out_a.shape == (batch, seq_len, d_model)
    assert jnp.allclose(out_a, ref, atol=1e-5), "one-hot path mismatch vs reference"

    # Path B: large-vocab gather path (forced here; small tile_s so the
    # double-buffered prefetch of the next seq tile is exercised).
    out_b = embedding_layer_forward(x_ids, word_emb_table, pe_table,
                                    force_gather=True, tile_s_max=8)
    out_b = jax.block_until_ready(out_b)
    assert out_b.shape == (batch, seq_len, d_model)
    assert jnp.allclose(out_b, ref, atol=1e-6), "gather path mismatch vs reference"

    print("KERNEL_OK")
</pallas_src>

<mosaic_0001>
module attributes {stable_mosaic.version = 11 : i64} {
  func.func @_onehot_kernel(%arg0: i32, %arg1: i32, %arg2: memref<1x16x1xi32, #tpu.memory_space<vmem>>, %arg3: memref<128x128xf32, #tpu.memory_space<vmem>>, %arg4: memref<16x128xf32, #tpu.memory_space<vmem>>, %arg5: memref<1x16x128xf32, #tpu.memory_space<vmem>>) attributes {dimension_semantics = [#tpu.dimension_semantics<parallel>, #tpu.dimension_semantics<parallel>], iteration_bounds = array<i64: 2, 1>, scalar_prefetch = 0 : i64, scratch_operands = 0 : i64, tpu.core_type = #tpu.core_type<tc>, window_params = [{transform_indices = @transform_0, window_bounds = array<i64: 1, 16, 1>}, {pipeline_mode = #tpu.pipeline_mode<synchronous>, transform_indices = @transform_1, window_bounds = array<i64: 128, 128>}, {transform_indices = @transform_2, window_bounds = array<i64: 16, 128>}, {transform_indices = @transform_3, window_bounds = array<i64: 1, 16, 128>}]} {
    %c0 = arith.constant 0 : index
    %c0_0 = arith.constant 0 : index
    %c0_1 = arith.constant 0 : index
    %0 = vector.load %arg2[%c0, %c0_0, %c0_1] : memref<1x16x1xi32, #tpu.memory_space<vmem>>, vector<1x16x1xi32>
    %1 = vector.shape_cast %0 : vector<1x16x1xi32> to vector<16x1xi32>
    %2 = tpu.iota {dimensions = array<i32: 1>} : vector<16x128xi32>
    %3 = vector.broadcast %1 : vector<16x1xi32> to vector<16x128xi32>
    %4 = arith.cmpi eq, %3, %2 : vector<16x128xi32>
    %5 = arith.extui %4 : vector<16x128xi1> to vector<16x128xi32>
    %6 = arith.sitofp %5 : vector<16x128xi32> to vector<16x128xf32>
    %c0_2 = arith.constant 0 : index
    %c0_3 = arith.constant 0 : index
    %7 = vector.load %arg3[%c0_2, %c0_3] : memref<128x128xf32, #tpu.memory_space<vmem>>, vector<128x128xf32>
    %cst = arith.constant dense<0.000000e+00> : vector<16x128xf32>
    %8 = tpu.matmul %6, %7, %cst {dimension_numbers = #tpu.dot_dimension_numbers<[1], [0], [0], [1], [0, 0, 1, 1], [], []>} : vector<16x128xf32>, vector<128x128xf32>, vector<16x128xf32> -> vector<16x128xf32>
    %c0_4 = arith.constant 0 : index
    %c0_5 = arith.constant 0 : index
    %9 = vector.load %arg4[%c0_4, %c0_5] : memref<16x128xf32, #tpu.memory_space<vmem>>, vector<16x128xf32>
    %10 = arith.addf %8, %9 : vector<16x128xf32>
    %c0_6 = arith.constant 0 : index
    %c0_7 = arith.constant 0 : index
    %c0_8 = arith.constant 0 : index
    %11 = vector.load %arg5[%c0_6, %c0_7, %c0_8] : memref<1x16x128xf32, #tpu.memory_space<vmem>>, vector<1x16x128xf32>
    %12 = vector.shape_cast %11 : vector<1x16x128xf32> to vector<16x128xf32>
    %13 = vector.shape_cast %10 : vector<16x128xf32> to vector<1x16x128xf32>
    tpu.vector_store %arg5[%c0_6, %c0_7, %c0_8], %13 {strides = array<i32>} : memref<1x16x128xf32, #tpu.memory_space<vmem>>, vector<1x16x128xf32>,
    return
  }
  func.func @transform_0(%arg0: i32, %arg1: i32) -> (i32, i32, i32) {
    %c0_i32 = arith.constant 0 : i32
    %c0_i32_0 = arith.constant 0 : i32
    return %arg0, %arg1, %c0_i32 : i32, i32, i32
  }
  func.func @transform_1(%arg0: i32, %arg1: i32) -> (i32, i32) {
    %c0_i32 = arith.constant 0 : i32
    %c0_i32_0 = arith.constant 0 : i32
    %c0_i32_1 = arith.constant 0 : i32
    return %c0_i32, %c0_i32_0 : i32, i32
  }
  func.func @transform_2(%arg0: i32, %arg1: i32) -> (i32, i32) {
    %c0_i32 = arith.constant 0 : i32
    %c0_i32_0 = arith.constant 0 : i32
    return %arg1, %c0_i32 : i32, i32
  }
  func.func @transform_3(%arg0: i32, %arg1: i32) -> (i32, i32, i32) {
    %c0_i32 = arith.constant 0 : i32
    %c0_i32_0 = arith.constant 0 : i32
    return %arg0, %arg1, %c0_i32 : i32, i32, i32
  }
}

</mosaic_0001>

<bundles_post_ra>
// kernel: tpu_custom_call.1
= control target key start
LH: loop header
LB: loop body
LE: loop exit
PB: predicated region body
PF: predicated region fallthrough
CT: control target
= control target key end

     0   :  { %8 = vsyncpa [#allocation3], 0  ;;  %s780_s0 = inlined_call_operand.vmem [shape: s32[2,16,1], index: 0, kind: input, shape index: {}]   ;;  %s781_s1 = inlined_call_operand.hbm [shape: f32[128,128], index: 1, kind: input, shape index: {}]   ;;  %s782_s2 = inlined_call_operand.vmem [shape: f32[16,128], index: 2, kind: input, shape index: {}]   ;;  %s783_s3 = inlined_call_operand.hbm [shape: f32[2,16,128], index: 3, kind: output, shape index: {}]  }
   0x1   :  { %9 = vsyncpa [#allocation4], 0 }
   0x2   :  { %11 = vsyncpa [#allocation4 + $0x1], 0  ;;  %s674_s12 = smov 0   ;;  %s676_s13 = smov 0  }
   0x3   :  { %s678_s14 = smov 0   ;;  %s680_s15 = smov 0  }
   0x4   :  { %s682_s16 = smov 0   ;;  %s684_s17 = smov 0  }
   0x5 LB: > { %s422_s18 = sadd.s32 4294967295, %s645_s17   ;;  %s423_s19 = sadd.s32 4294967294, %s645_s17   ;;  %s645_s17 = sphi %s684_s17, %s17_s17   ;;  %s641_s16 = sphi %s682_s16, %s790_s16   ;;  %s637_s15 = sphi %s680_s15, %s789_s15   ;;  %s633_s14 = sphi %s678_s14, %s788_s14   ;;  %s629_s13 = sphi %s676_s13, %s787_s13   ;;  %s625_s12 = sphi %s674_s12, %s786_s12  }
   0x6   : > { %s29_s20 = sadd.s32 1, %s641_s16  ;;  %s113_s21 = sadd.s32 1, %s633_s14 }
   0x7   : > { %p31_p0 = scmp.ge.s32.totalorder %s29_s20, 2  ;;  %p123_p1 = scmp.ne.s32.totalorder %s633_s14, %s629_s13 }
   0x8   : > { %p124_p2 = scmp.eq.s32.totalorder %s422_s18, 1  ;;  %p129_p3 = scmp.ne.s32.totalorder %s629_s13, %s625_s12 }
   0x9   : > { %s792_s20 = smov (%p31_p0, %s29_s20), 0  ;;  %p130_p5 = scmp.eq.s32.totalorder %s423_s19, 1 }
   0xa   : > { %p714_p4 = por %p124_p2, %p123_p1  ;;  %s108_s23 = ssub.s32 %s641_s16, %s792_s20 }
   0xb   : > { %p424_p6 = scmp.ge.s32.totalorder %s645_s17, 1  ;;  %p111_p7 = scmp.eq.s32.totalorder %s108_s23, 0 }
   0xc   : > { %p721_p8 = por %p130_p5, %p129_p3  ;;  %p137_p9 = scmp.lt.s32.totalorder %s645_s17, 3 }
   0xd   : > { %s727_s25 = scalar_select %p111_p7, %s633_s14, %s113_s21  }
   0xe   : > { %p138_p10 = pnand %p424_p6, %p137_p9  ;;  %p474_p11 = scmp.eq.s32.totalorder %s422_s18, 0 }
   0xf   : > { %s148_s28 = sshll.u32 %s781_s1, 4  ;;  %s647_s29 = smov [#allocation2]   ;;  %s149_s28 = int_to_ptr.hbm [resolvable:$true] %s148_s28 }
  0x10   : > { %p466_p12 = pneg %p138_p10  ;;  %s150_s30 = sshll.u32 %s647_s29, 4  ;;  %s151_s30 = int_to_ptr.vmem [resolvable:$true] %s150_s30 }
  0x11   : > { %s648_s4 = smov 128   ;;  %s649_s5 = smov 8  }
  0x12   : > { %p467_p13 = pnand %p474_p11, %p466_p12  ;;  %188 = sbr.rel (%p138_p10) target bundleno = 287 (0x11f), region = 32 }
  0x14   : > { %469 = dma.hbm_to_vmem [thread:$0]  (!%p467_p13), %s149_s28, 2048, %s151_s30, [#allocation3], %s648_s4, %s648_s4, %s649_s5  }
  0x17   : > { %616 = dma.done.wait (%p474_p11), [#allocation3], 2048  }
  0x18   : > { %618 = vsyncadd (%p474_p11), [#allocation3], 4294965248  ;;  %p223_p0 = scmp.lt.s32.totalorder %s637_s15, 1  ;;  %v650_v0 = vmov 0   ;;  %v270_v2 = vld [vmem:[#allocation2 + $0x78] sm:$0xff]  ;;  %v269_v3 = vld [vmem:[#allocation2 + $0x70] sm:$0xff]  ;;  %v241_v19 = vlaneseq }
  0x19   : > { %532 = vset.pattern.permute.xlu0 %v650_v0  ;;  %273 = vmatpush.msra.mxu0 %v270_v2  ;;  %v268_v4 = vld [vmem:[#allocation2 + $0x68] sm:$0xff]  ;;  %v267_v5 = vld [vmem:[#allocation2 + $0x60] sm:$0xff]  ;;  %v266_v7 = vld [vmem:[#allocation2 + $0x58] sm:$0xff]  ;;  %v651_v22 = vmov 1.0   ;;  %s219_s11 = sand.u32 1, %s629_s13   ;;  %s443_s23 = sshll.u32 %s637_s15, 4 }
  0x1a   : > { %s224_s6 = scalar_select %p223_p0, %s637_s15, 1  ;;  %444 = vmatpush.msra.mxu1 %v270_v2  ;;  %v265_v8 = vld [vmem:[#allocation2 + $0x50] sm:$0xff]  ;;  %v264_v9 = vld [vmem:[#allocation2 + $0x48] sm:$0xff]  ;;  %v263_v10 = vld [vmem:[#allocation2 + $0x40] sm:$0xff]  ;;  %v242_v20 = vand.u32 127, %v241_v19 }
  0x1b   : > { %274 = vmatpush.msra.mxu0 %v269_v3  ;;  %v262_v11 = vld [vmem:[#allocation2 + $0x38] sm:$0xff]  ;;  %v261_v12 = vld [vmem:[#allocation2 + $0x30] sm:$0xff]  ;;  %v260_v13 = vld [vmem:[#allocation2 + $0x28] sm:$0xff]  ;;  %s430_s18 = sshll.u32 %s219_s11, 4  ;;  %s312_s28 = scalar_lea.hbm %s783_s3, %s443_s23 }
  0x1c   : > { %s442_s7 = sshll.u32 %s224_s6, 4  ;;  %445 = vmatpush.msra.mxu1 %v269_v3  ;;  %v259_v14 = vld [vmem:[#allocation2 + $0x20] sm:$0xff]  ;;  %v258_v15 = vld [vmem:[#allocation2 + $0x18] sm:$0xff]  ;;  %v257_v16 = vld [vmem:[#allocation2 + $0x10] sm:$0xff]  ;;  %s221_s29 = scalar_lea.vmem [#allocation5], %s430_s18 }
  0x1d   : > { %s230_s10 = scalar_lea.vmem %s780_s0, %s442_s7  ;;  %275 = vmatpush.msra.mxu0 %v268_v4  ;;  %v256_v17 = vld [vmem:[#allocation2 + $0x8] sm:$0xff]  ;;  %v255_v18 = vld [vmem:[#allocation2] sm:$0xff]  ;;  %s313_s30 = sshll.u32 %s221_s29, 4  ;;  %s314_s30 = int_to_ptr.vmem [resolvable:$true] %s313_s30 }
  0x1e   : > { %v239_v1 = vld [vmem:[%s230_s10] sm:$0xff]  ;;  %v240_v6 = vld [vmem:[%s230_s10 + $0x8] sm:$0xff]  ;;  %446 = vmatpush.msra.mxu1 %v268_v4  ;;  %s315_s4 = sshll.u32 %s312_s28, 4  ;;  %s299_s15 = scalar_lea.sflag [#allocation4], %s219_s11  ;;  %s316_s4 = int_to_ptr.hbm [resolvable:$true] %s315_s4 }
  0x1f   : > { %244 = vperm.xlu0 %532, %v239_v1   ;;  %276 = vmatpush.msra.mxu0 %v267_v5  ;;  %v271_v24 = vld [vmem:[%s782_s2] sm:$0xff]  ;;  %v272_v27 = vld [vmem:[%s782_s2 + $0x8] sm:$0xff]  ;;  %s577_s7 = sshra.s32 %s316_s4, 4  ;;  %s583_s18 = scalar_lea.hbm %s783_s3, 32  ;;  %s578_s7 = int_to_ptr.hbm [resolvable:$true] %s577_s7 }
  0x20   : > { %447 = vmatpush.msra.mxu1 %v267_v5  ;;  %s579_s8 = scalar_lea.hbm %s578_s7, 16  ;;  %p584_p5 = scmp.lt.s32.totalorder %s578_s7, %s783_s3 }
  0x21   : > { %277 = vmatpush.msra.mxu0 %v266_v7  ;;  %p580_p1 = scmp.ne.s32.totalorder %s578_s7, %s579_s8  ;;  %p585_p6 = scmp.lt.s32.totalorder %s583_s18, %s579_s8 }
  0x22   : > { %448 = vmatpush.msra.mxu1 %v266_v7 }
  0x23   : > { %278 = vmatpush.msra.mxu0 %v265_v8  ;;  %p581_p2 = pnand %p580_p1, %p714_p4  ;;  %p586_p7 = por %p585_p6, %p584_p5 }
  0x24   : > { %449 = vmatpush.msra.mxu1 %v265_v8 }
  0x25   : > { %279 = vmatpush.msra.mxu0 %v264_v9  ;;  %p582_p3 = pneg %p581_p2 }
  0x26   : > { %450 = vmatpush.msra.mxu1 %v264_v9 }
  0x27   : > { %247 = vperm.xlu0 %532, %v240_v6   ;;  %280 = vmatpush.msra.mxu0 %v263_v10  ;;  %p587_p9 = pnand %p586_p7, %p582_p3 }
  0x28   : > { %451 = vmatpush.msra.mxu1 %v263_v10 }
  0x29   : > { %281 = vmatpush.msra.mxu0 %v262_v11 }
  0x2a   : > { %452 = vmatpush.msra.mxu1 %v262_v11 }
  0x2b   : > { %282 = vmatpush.msra.mxu0 %v261_v12 }
  0x2c   : > { %453 = vmatpush.msra.mxu1 %v261_v12 }
  0x2d   : > { %283 = vmatpush.msra.mxu0 %v260_v13 }
  0x2e   : > { %454 = vmatpush.msra.mxu1 %v260_v13 }
  0x2f   : > { %284 = vmatpush.msra.mxu0 %v259_v14 }
  0x30   : > { %455 = vmatpush.msra.mxu1 %v259_v14 }
  0x31   : > { %285 = vmatpush.msra.mxu0 %v258_v15 }
  0x32   : > { %456 = vmatpush.msra.mxu1 %v258_v15 }
  0x33   : > { %286 = vmatpush.msra.mxu0 %v257_v16 }
  0x34   : > { %457 = vmatpush.msra.mxu1 %v257_v16 }
  0x35   : > { %287 = vmatpush.msra.mxu0 %v256_v17 }
  0x36   : > { %458 = vmatpush.msra.mxu1 %v256_v17 }
  0x37   : > { %288 = vmatpush.msra.mxu0 %v255_v18 }
  0x38   : > { %459 = vmatpush.msra.mxu1 %v255_v18 }
  0x91   : > { %v245_v21 = vpop.permute.xlu0 %244 }
  0x92   : > { %vm249_vm0 = vcmp.eq.s32.totalorder %v245_v21, %v242_v20 }
  0x93   : > { %435 = vmatmul.msk.f32.vlgmr.msra.gmra.mxu0 %vm249_vm0, %v651_v22 }
  0x99   : > { %v248_v23 = vpop.permute.xlu0 %247 }
  0x9a   : > { %vm250_vm1 = vcmp.eq.s32.totalorder %v248_v23, %v242_v20 }
  0x9b   : > { %436 = vmatmul.msk.f32.vlgmr.msra.gmra.mxu1 %vm250_vm1, %v651_v22 }
 0x110   : > { %v290_v25 = vpop.f32.mrf.mxu0 }
 0x111   : > { %v291_v26 = vadd.f32 %v290_v25, %v271_v24 }
 0x113   : > { %296 = vst [vmem:[%s221_s29] sm:$0xff] %v291_v26 }
 0x118   : > { %v293_v28 = vpop.f32.mrf.mxu1 }
 0x119   : > { %v294_v29 = vadd.f32 %v293_v28, %v272_v27 }
 0x11b   : > { %297 = vst [vmem:[%s221_s29 + $0x8] sm:$0xff] %v294_v29 }
 0x11c   : > { %590 = shalt.err (!%p587_p9)
}
 0x11d   : > { %s652_s11 = smov 128   ;;  %s653_s23 = smov 8  }
 0x11e   : > { %464 = dma.vmem_to_hbm [thread:$0]  (%p714_p4), %s314_s30, 256, %s316_s4, %s299_s15, %s652_s11, %s652_s11, %s653_s23  }
 0x11f PF: > { %p476_p10 = scmp.ge.s32.totalorder %s645_s17, 2  ;;  %s330_s26 = sand.u32 1, %s625_s12  }
 0x120   : > { %s331_s27 = scalar_lea.sflag [#allocation4], %s330_s26 }
 0x121   : > { %p471_p11 = pnand %p476_p10, %p721_p8 }
 0x123   : > { %p472_p12 = pneg %p471_p11 }
 0x125   : > { %620 = dma.done.wait (%p472_p12), %s331_s27, 256  }
 0x126   : > { %622 = vsyncadd (%p472_p12), %s331_s27, 4294967040  ;;  %s17_s17 = sadd.s32 1, %s645_s17   ;;  %s786_s12 = smov %s629_s13 }
 0x127   : > { %p14_p13 = scmp.ge.s32.totalorder %s17_s17, 4   ;;  %s787_s13 = smov %s633_s14 }
 0x128   : > { %s788_s14 = smov %s727_s25  ;;  %s789_s15 = smov %s641_s16 }
 0x129   : > { %s790_s16 = smov %s792_s20  ;;  %16 = sbr.rel (!%p14_p13) target bundleno = 5 (0x5), region = 75 }
 0x12e   :  { %337 = vsyncpa [#allocation3], 1 }
 0x12f   :  { %339 = vsyncpa [#allocation3 + $0x1], 1 }
 0x130   :  { %340 = vsyncpa [#allocation4], 1 }
 0x131   :  { %342 = vsyncpa [#allocation4 + $0x1], 1 }

</bundles_post_ra>
